<compile_context>
chip_gen: v7x
topology: tpu7x:2x2x1
jax: 0.10.0
libtpu: 0.0.40
codegen_flags: <defaults>
</compile_context>

<pallas_src>
import functools
import numpy as np
import jax
import jax.numpy as jnp
from jax.experimental import pallas as pl
from jax.experimental.pallas import tpu as pltpu

# --- small, module-consistent sizes (original defaults: in=512, mid=128) ---
BATCH = 2
IN_DIMS = 64
MID_DIMS = 32
L = MID_DIMS // 2          # complex sequence length inside the channel
SNR = 15                   # dB, as in channel_net(snr=15)

# --- per-row data slab (bf16): [x | h_re | h_im | noise | pad] = 128 lanes ---
X_LO, X_HI = 0, IN_DIMS
HRE_LO, HRE_HI = X_HI, X_HI + L
HIM_LO, HIM_HI = HRE_HI, HRE_HI + L
NZ_LO, NZ_HI = HIM_HI, HIM_HI + L
DATA_W = 128

# --- constants slab (f32, fetched once): rows 0..31 = [A | B | W_dec^T],
#     row 32 = [b_enc | b_dec | 0], rows 33..39 = 0 ---
A_LO, A_HI = 0, 2 * L
B_LO, B_HI = A_HI, A_HI + 2 * L
WDEC_LO, WDEC_HI = B_HI, B_HI + IN_DIMS
BIAS_ROW = MID_DIMS
CONST_ROWS = 40
CONST_W = 128

OUT_W = MID_DIMS + MID_DIMS + IN_DIMS   # 128: [ch_code | ch_noisy | decoded]

ROW_ALIGN = 16          # bf16 sublane packing (16 rows/vreg)
TILE_ROWS_MAX = 1024    # batch-tile cap; keeps VMEM tiny even on v7x (64 MiB/TC)


def _round_up(n, m):
    return ((n + m - 1) // m) * m


def _make_kernel(inv_scale):
    """Kernel closure; inv_scale folds the npower denominator and 10**(snr/10)."""
    inv = np.float32(inv_scale)

    def kernel(data_ref, wenc_ref, mats_ref, out_ref):
        f32 = jnp.float32
        data = data_ref[...].astype(f32)               # (T, 128) bf16 -> f32
        x     = data[:, X_LO:X_HI]                     # (T, 64)
        h_re  = data[:, HRE_LO:HRE_HI]                 # (T, 16)
        h_im  = data[:, HIM_LO:HIM_HI]                 # (T, 16)
        noise = data[:, NZ_LO:NZ_HI]                   # (T, 16)

        mats = mats_ref[...]                           # (40, 128) f32, VMEM-resident
        a_mat = mats[0:MID_DIMS, A_LO:A_HI]            # (32, 32) de-interleave + DFT
        b_mat = mats[0:MID_DIMS, B_LO:B_HI]            # (32, 32) IDFT + re-interleave
        wdec  = mats[0:MID_DIMS, WDEC_LO:WDEC_HI]      # (32, 64) W_dec^T
        brow  = mats[BIAS_ROW:BIAS_ROW + 1, :]         # (1, 128) bias row
        b_enc = brow[:, 0:MID_DIMS]                    # (1, 32)
        b_dec = brow[:, MID_DIMS:MID_DIMS + IN_DIMS]   # (1, 64)

        # ---- encoder linear: ch_code = x @ W_enc^T + b_enc ----
        ch = jnp.dot(x, wenc_ref[...], preferred_element_type=f32) + b_enc

        # ---- de-interleave + FFT as one real matmul: [xf_re | xf_im] = ch @ A ----
        xf = jnp.dot(ch, a_mat, preferred_element_type=f32)       # (T, 32)
        xf_re, xf_im = xf[:, :L], xf[:, L:]

        # ---- frequency-domain fading channel: y_fft = h_fft * x_fft ----
        yf_re = h_re * xf_re - h_im * xf_im
        yf_im = h_re * xf_im + h_im * xf_re

        # ---- complex sum(y_fft**2) (torch semantics); SNR + denominator folded ----
        np_re = jnp.sum(yf_re * yf_re - yf_im * yf_im) * inv
        np_im = jnp.sum(2.0 * yf_re * yf_im) * inv

        # ---- additive noise: real randn draw scaled by the complex npower ----
        ya = jnp.concatenate([yf_re + noise * np_re,
                              yf_im + noise * np_im], axis=-1)    # (T, 32)

        # ---- IFFT + re-interleave as one real matmul ----
        ch_noisy = jnp.dot(ya, b_mat, preferred_element_type=f32)  # (T, 32)

        # ---- decoder linear: out = ch_noisy @ W_dec^T + b_dec ----
        dec = jnp.dot(ch_noisy, wdec, preferred_element_type=f32) + b_dec

        # ---- single lane-dense (T, 128) store: [ch_code | ch_noisy | decoded] ----
        out_ref[...] = jnp.concatenate([ch, ch_noisy, dec], axis=-1)

    return kernel


def make_constants():
    # DFT matrices: X = x @ F with F[n,k] = exp(-2j*pi*n*k/L)
    n = np.arange(L)
    nk = np.outer(n, n).astype(np.float64) * (2.0 * np.pi / L)
    F_re, F_im = np.cos(nk), -np.sin(nk)
    # inverse DFT: x = X @ (conj(F) / L)
    Fi_re, Fi_im = np.cos(nk) / L, np.sin(nk) / L
    # even/odd selection matrices (MID, L)
    E = np.zeros((MID_DIMS, L))
    O = np.zeros((MID_DIMS, L))
    E[2 * n, n] = 1.0            # even feature positions -> real part
    O[2 * n + 1, n] = 1.0        # odd  feature positions -> imag part
    # fused de-interleave + DFT:   [xf_re | xf_im] = ch @ A
    A = np.concatenate([E @ F_re - O @ F_im, E @ F_im + O @ F_re], axis=1)
    # fused IDFT + re-interleave:  ch_noisy = [ya_re | ya_im] @ B
    B = np.concatenate([Fi_re @ E.T + Fi_im @ O.T,
                        Fi_re @ O.T - Fi_im @ E.T], axis=0)
    return jnp.asarray(A, jnp.float32), jnp.asarray(B, jnp.float32)


def make_params(key):
    k = jax.random.split(key, 6)
    # nn.Linear-style init (uniform in +-1/sqrt(fan_in)); stored pre-transposed.
    lim_enc = 1.0 / np.sqrt(IN_DIMS)
    lim_dec = 1.0 / np.sqrt(MID_DIMS)
    w_enc_t = jax.random.uniform(k[0], (IN_DIMS, MID_DIMS), jnp.float32,
                                 -lim_enc, lim_enc)
    b_enc = jax.random.uniform(k[1], (1, MID_DIMS), jnp.float32,
                               -lim_enc, lim_enc)
    w_dec_t = jax.random.uniform(k[2], (MID_DIMS, IN_DIMS), jnp.float32,
                                 -lim_dec, lim_dec)
    b_dec = jax.random.uniform(k[3], (1, IN_DIMS), jnp.float32,
                               -lim_dec, lim_dec)
    # deterministic synthetic channel H (real/imag) and the randn noise draw
    h = jax.random.normal(k[4], (BATCH, L, 2), jnp.float32)
    noise = jax.random.normal(k[5], (BATCH, L), jnp.float32)
    return w_enc_t, b_enc, w_dec_t, b_dec, h[..., 0], h[..., 1], noise


@jax.jit
def channel_net_forward(x, params, consts):
    w_enc_t, b_enc, w_dec_t, b_dec, h_re, h_im, noise = params
    A, B = consts

    batch = x.shape[0]
    tile = min(TILE_ROWS_MAX, _round_up(batch, ROW_ALIGN))
    padded = _round_up(batch, tile)
    grid = padded // tile

    # npower = sum(y_fft**2) / (feature_len * batch // 2) / 10**(snr/10); the
    # denominator/SNR terms are folded into one scale derived from the RUNTIME batch.
    inv_scale = 1.0 / ((batch * MID_DIMS // 2) * (10.0 ** (SNR / 10.0)))

    # per-row bf16 slab: [x | h_re | h_im | noise | pad] -> 128 lanes, 256 B/row.
    # Padded rows are zero (h == 0) so they contribute nothing to the npower sum.
    data = jnp.concatenate([x, h_re, h_im, noise], axis=-1)          # (batch, 112)
    data = jnp.pad(data, ((0, padded - batch), (0, DATA_W - data.shape[-1])))
    data = data.astype(jnp.bfloat16)

    # one-time f32 constants slab: [A | B | W_dec^T] rows 0..31, bias row at 32.
    bias_row = jnp.concatenate(
        [b_enc, b_dec,
         jnp.zeros((1, CONST_W - MID_DIMS - IN_DIMS), jnp.float32)], axis=-1)
    mats = jnp.concatenate([A, B, w_dec_t], axis=-1)                 # (32, 128)
    mats = jnp.concatenate([mats, bias_row], axis=0)                 # (33, 128)
    mats = jnp.pad(mats, ((0, CONST_ROWS - mats.shape[0]), (0, 0)))  # (40, 128)

    kernel = _make_kernel(inv_scale)
    packed = pl.pallas_call(
        kernel,
        grid=(grid,),
        out_shape=jax.ShapeDtypeStruct((padded, OUT_W), jnp.float32),
        in_specs=[
            # per-batch tile of the data slab (the only per-row HBM stream)
            pl.BlockSpec((tile, DATA_W), lambda i: (i, 0)),
            # weights/constants: constant index_map -> DMA'd once, VMEM-resident
            pl.BlockSpec((IN_DIMS, MID_DIMS), lambda i: (0, 0)),
            pl.BlockSpec((CONST_ROWS, CONST_W), lambda i: (0, 0)),
        ],
        out_specs=pl.BlockSpec((tile, OUT_W), lambda i: (i, 0)),
        compiler_params=pltpu.CompilerParams(
            dimension_semantics=("parallel",)),   # shard batch tiles across TCs
    )(data, w_enc_t, mats)

    ch_code = packed[:batch, :MID_DIMS]
    ch_noisy = packed[:batch, MID_DIMS:2 * MID_DIMS]
    x_dec = packed[:batch, 2 * MID_DIMS:]
    return ch_code, ch_noisy, x_dec


if __name__ == "__main__":
    key = jax.random.PRNGKey(0)
    k_x, k_p = jax.random.split(key)
    x = jax.random.normal(k_x, (BATCH, IN_DIMS), jnp.float32)
    params = make_params(k_p)
    consts = make_constants()

    ch_code, ch_code_with_n, x_dec = jax.block_until_ready(
        channel_net_forward(x, params, consts))

    assert ch_code.shape == (BATCH, MID_DIMS)
    assert ch_code_with_n.shape == (BATCH, MID_DIMS)
    assert x_dec.shape == (BATCH, IN_DIMS)
    assert all(bool(jnp.all(jnp.isfinite(t)))
               for t in (ch_code, ch_code_with_n, x_dec))
    print("KERNEL_OK")
</pallas_src>

<mosaic_0001>
module attributes {stable_mosaic.version = 11 : i64} {
  func.func @kernel(%arg0: i32, %arg1: memref<16x128xbf16, #tpu.memory_space<vmem>>, %arg2: memref<64x32xf32, #tpu.memory_space<vmem>>, %arg3: memref<40x128xf32, #tpu.memory_space<vmem>>, %arg4: memref<16x128xf32, #tpu.memory_space<vmem>>) attributes {dimension_semantics = [#tpu.dimension_semantics<parallel>], iteration_bounds = array<i64: 1>, scalar_prefetch = 0 : i64, scratch_operands = 0 : i64, tpu.core_type = #tpu.core_type<tc>, window_params = [{transform_indices = @transform_0, window_bounds = array<i64: 16, 128>}, {pipeline_mode = #tpu.pipeline_mode<synchronous>, transform_indices = @transform_1, window_bounds = array<i64: 64, 32>}, {pipeline_mode = #tpu.pipeline_mode<synchronous>, transform_indices = @transform_2, window_bounds = array<i64: 40, 128>}, {transform_indices = @transform_3, window_bounds = array<i64: 16, 128>}]} {
    %c0 = arith.constant 0 : index
    %c0_0 = arith.constant 0 : index
    %0 = vector.load %arg1[%c0, %c0_0] : memref<16x128xbf16, #tpu.memory_space<vmem>>, vector<16x128xbf16>
    %1 = arith.extf %0 : vector<16x128xbf16> to vector<16x128xf32>
    %2 = vector.extract_strided_slice %1 {offsets = [0, 0], sizes = [16, 64], strides = [1, 1]} : vector<16x128xf32> to vector<16x64xf32>
    %3 = vector.extract_strided_slice %1 {offsets = [0, 64], sizes = [16, 16], strides = [1, 1]} : vector<16x128xf32> to vector<16x16xf32>
    %4 = vector.extract_strided_slice %1 {offsets = [0, 80], sizes = [16, 16], strides = [1, 1]} : vector<16x128xf32> to vector<16x16xf32>
    %5 = vector.extract_strided_slice %1 {offsets = [0, 96], sizes = [16, 16], strides = [1, 1]} : vector<16x128xf32> to vector<16x16xf32>
    %c0_1 = arith.constant 0 : index
    %c0_2 = arith.constant 0 : index
    %6 = vector.load %arg3[%c0_1, %c0_2] : memref<40x128xf32, #tpu.memory_space<vmem>>, vector<40x128xf32>
    %7 = vector.extract_strided_slice %6 {offsets = [0, 0], sizes = [32, 32], strides = [1, 1]} : vector<40x128xf32> to vector<32x32xf32>
    %8 = vector.extract_strided_slice %6 {offsets = [0, 32], sizes = [32, 32], strides = [1, 1]} : vector<40x128xf32> to vector<32x32xf32>
    %9 = vector.extract_strided_slice %6 {offsets = [0, 64], sizes = [32, 64], strides = [1, 1]} : vector<40x128xf32> to vector<32x64xf32>
    %10 = vector.extract_strided_slice %6 {offsets = [32, 0], sizes = [1, 128], strides = [1, 1]} : vector<40x128xf32> to vector<1x128xf32>
    %11 = vector.extract_strided_slice %10 {offsets = [0, 0], sizes = [1, 32], strides = [1, 1]} : vector<1x128xf32> to vector<1x32xf32>
    %12 = vector.extract_strided_slice %10 {offsets = [0, 32], sizes = [1, 64], strides = [1, 1]} : vector<1x128xf32> to vector<1x64xf32>
    %c0_3 = arith.constant 0 : index
    %c0_4 = arith.constant 0 : index
    %13 = vector.load %arg2[%c0_3, %c0_4] : memref<64x32xf32, #tpu.memory_space<vmem>>, vector<64x32xf32>
    %cst = arith.constant dense<0.000000e+00> : vector<16x32xf32>
    %14 = tpu.matmul %2, %13, %cst {dimension_numbers = #tpu.dot_dimension_numbers<[1], [0], [0], [1], [0, 0, 1, 1], [], []>} : vector<16x64xf32>, vector<64x32xf32>, vector<16x32xf32> -> vector<16x32xf32>
    %15 = vector.broadcast %11 : vector<1x32xf32> to vector<16x32xf32>
    %16 = arith.addf %14, %15 : vector<16x32xf32>
    %cst_5 = arith.constant dense<0.000000e+00> : vector<16x32xf32>
    %17 = tpu.matmul %16, %7, %cst_5 {dimension_numbers = #tpu.dot_dimension_numbers<[1], [0], [0], [1], [0, 0, 1, 1], [], []>} : vector<16x32xf32>, vector<32x32xf32>, vector<16x32xf32> -> vector<16x32xf32>
    %18 = vector.extract_strided_slice %17 {offsets = [0, 0], sizes = [16, 16], strides = [1, 1]} : vector<16x32xf32> to vector<16x16xf32>
    %19 = vector.extract_strided_slice %17 {offsets = [0, 16], sizes = [16, 16], strides = [1, 1]} : vector<16x32xf32> to vector<16x16xf32>
    %20 = arith.mulf %3, %18 : vector<16x16xf32>
    %21 = arith.mulf %4, %19 : vector<16x16xf32>
    %22 = arith.subf %20, %21 : vector<16x16xf32>
    %23 = arith.mulf %3, %19 : vector<16x16xf32>
    %24 = arith.mulf %4, %18 : vector<16x16xf32>
    %25 = arith.addf %23, %24 : vector<16x16xf32>
    %26 = arith.mulf %22, %22 : vector<16x16xf32>
    %27 = arith.mulf %25, %25 : vector<16x16xf32>
    %28 = arith.subf %26, %27 : vector<16x16xf32>
    %29 = vector.shape_cast %28 : vector<16x16xf32> to vector<1x16x16xf32>
    %cst_6 = arith.constant dense<0.000000e+00> : vector<1xf32>
    %30 = vector.multi_reduction <add>, %29, %cst_6 [1, 2] : vector<1x16x16xf32> to vector<1xf32>
    %31 = vector.shape_cast %30 : vector<1xf32> to vector<1x1x1xf32>
    %32 = vector.extract %31[0, 0, 0] : f32 from vector<1x1x1xf32>
    %cst_7 = arith.constant 9.88211715E-4 : f32
    %33 = arith.mulf %32, %cst_7 : f32
    %cst_8 = arith.constant 2.000000e+00 : f32
    %34 = vector.broadcast %cst_8 : f32 to vector<16x16xf32>
    %35 = arith.mulf %34, %22 : vector<16x16xf32>
    %36 = arith.mulf %35, %25 : vector<16x16xf32>
    %37 = vector.shape_cast %36 : vector<16x16xf32> to vector<1x16x16xf32>
    %cst_9 = arith.constant dense<0.000000e+00> : vector<1xf32>
    %38 = vector.multi_reduction <add>, %37, %cst_9 [1, 2] : vector<1x16x16xf32> to vector<1xf32>
    %39 = vector.shape_cast %38 : vector<1xf32> to vector<1x1x1xf32>
    %40 = vector.extract %39[0, 0, 0] : f32 from vector<1x1x1xf32>
    %cst_10 = arith.constant 9.88211715E-4 : f32
    %41 = arith.mulf %40, %cst_10 : f32
    %42 = vector.broadcast %33 : f32 to vector<16x16xf32>
    %43 = arith.mulf %5, %42 : vector<16x16xf32>
    %44 = arith.addf %22, %43 : vector<16x16xf32>
    %45 = vector.broadcast %41 : f32 to vector<16x16xf32>
    %46 = arith.mulf %5, %45 : vector<16x16xf32>
    %47 = arith.addf %25, %46 : vector<16x16xf32>
    %48 = tpu.concatenate %44, %47 in 1 : vector<16x16xf32>, vector<16x16xf32> -> vector<16x32xf32>
    %cst_11 = arith.constant dense<0.000000e+00> : vector<16x32xf32>
    %49 = tpu.matmul %48, %8, %cst_11 {dimension_numbers = #tpu.dot_dimension_numbers<[1], [0], [0], [1], [0, 0, 1, 1], [], []>} : vector<16x32xf32>, vector<32x32xf32>, vector<16x32xf32> -> vector<16x32xf32>
    %cst_12 = arith.constant dense<0.000000e+00> : vector<16x64xf32>
    %50 = tpu.matmul %49, %9, %cst_12 {dimension_numbers = #tpu.dot_dimension_numbers<[1], [0], [0], [1], [0, 0, 1, 1], [], []>} : vector<16x32xf32>, vector<32x64xf32>, vector<16x64xf32> -> vector<16x64xf32>
    %51 = vector.broadcast %12 : vector<1x64xf32> to vector<16x64xf32>
    %52 = arith.addf %50, %51 : vector<16x64xf32>
    %53 = tpu.concatenate %16, %49, %52 in 1 : vector<16x32xf32>, vector<16x32xf32>, vector<16x64xf32> -> vector<16x128xf32>
    %c0_13 = arith.constant 0 : index
    %c0_14 = arith.constant 0 : index
    %54 = vector.load %arg4[%c0_13, %c0_14] : memref<16x128xf32, #tpu.memory_space<vmem>>, vector<16x128xf32>
    tpu.vector_store %arg4[%c0_13, %c0_14], %53 {strides = array<i32>} : memref<16x128xf32, #tpu.memory_space<vmem>>, vector<16x128xf32>,
    return
  }
  func.func @transform_0(%arg0: i32) -> (i32, i32) {
    %c0_i32 = arith.constant 0 : i32
    %c0_i32_0 = arith.constant 0 : i32
    return %arg0, %c0_i32 : i32, i32
  }
  func.func @transform_1(%arg0: i32) -> (i32, i32) {
    %c0_i32 = arith.constant 0 : i32
    %c0_i32_0 = arith.constant 0 : i32
    %c0_i32_1 = arith.constant 0 : i32
    return %c0_i32, %c0_i32_0 : i32, i32
  }
  func.func @transform_2(%arg0: i32) -> (i32, i32) {
    %c0_i32 = arith.constant 0 : i32
    %c0_i32_0 = arith.constant 0 : i32
    %c0_i32_1 = arith.constant 0 : i32
    return %c0_i32, %c0_i32_0 : i32, i32
  }
  func.func @transform_3(%arg0: i32) -> (i32, i32) {
    %c0_i32 = arith.constant 0 : i32
    %c0_i32_0 = arith.constant 0 : i32
    return %arg0, %c0_i32 : i32, i32
  }
}

</mosaic_0001>

<bundles_post_ra>
// kernel: channel_net_forward.1
= control target key start
LH: loop header
LB: loop body
LE: loop exit
PB: predicated region body
PF: predicated region fallthrough
CT: control target
= control target key end

     0   :  { %vm35_vm0 = vcmask 523264   ;;  %v31_v21 = vlaneseq  ;;  %vm117_vm1 = vcmask 261120   ;;  %s723_s11 = smov 64   ;;  %s724_s12 = smov 48   ;;  %vm259_vm2 = vcmask 130048   ;;  %s906_s1 = inlined_call_operand.vmem [shape: f32[64,32], index: 1, kind: input, shape index: {}]   ;;  %s907_s0 = inlined_call_operand.vmem [shape: bf16[16,128], index: 0, kind: input, shape index: {}]   ;;  %s908_s2 = inlined_call_operand.vmem [shape: f32[40,128], index: 2, kind: input, shape index: {}]   ;;  %s909_s3 = inlined_call_operand.vmem [shape: f32[16,128], index: 3, kind: output, shape index: {}]  }
   0x1   :  { %v23_v0 = vld [vmem:[%s906_s1] sm:$0xff]  ;;  %v24_v1 = vld [vmem:[%s906_s1 + $0x8] sm:$0xff]  ;;  %v25_v2 = vld [vmem:[%s906_s1 + $0x10] sm:$0xff]  ;;  %s725_s13 = smov 112   ;;  %s726_s18 = smov 96  }
   0x2   :  { %v652_v3 = vpack.c.bf16 %v24_v1, %v23_v0  ;;  %v26_v4 = vld [vmem:[%s906_s1 + $0x18] sm:$0xff]  ;;  %v27_v6 = vld [vmem:[%s906_s1 + $0x20] sm:$0xff]  ;;  %v28_v7 = vld [vmem:[%s906_s1 + $0x28] sm:$0xff]  ;;  %v32_v22 = vshrl.u32 %v31_v21, 7  ;;  %s727_s19 = smov 32  }
   0x3   :  { %v656_v5 = vpack.c.bf16 %v26_v4, %v25_v2  ;;  %v569_v8 = vld [vmem:[%s907_s0] sm:$0xff]   ;;  %v779_v11 = vld [vmem:[%s908_s2 + $0x8] sm:$0xff]  ;;  %v660_v13 = vpack.c.bf16 %v28_v7, %v27_v6  ;;  %v29_v14 = vld [vmem:[%s906_s1 + $0x30] sm:$0xff] }
   0x4   :  { %653 = vmatprep.subr.bf16.mxu0 %v652_v3  ;;  %v769_v9 = vunpack.c.l.bf16 %v569_v8  ;;  %v774_v10 = vld [vmem:[%s908_s2] sm:$0xff]  ;;  %v30_v15 = vld [vmem:[%s906_s1 + $0x38] sm:$0xff]  ;;  %v791_v17 = vunpack.c.h.bf16 %v569_v8  ;;  %v798_v18 = vld [vmem:[%s908_s2 + $0x10] sm:$0xff]  ;;  %v33_v23 = vsub.s32 0, %v32_v22 }
   0x5   :  { %655 = vmatpush3.bf16.msra.mxu0 %v652_v3  ;;  %v668_v12 = vpack.c.bf16 %v779_v11, %v774_v10  ;;  %v664_v16 = vpack.c.bf16 %v30_v15, %v29_v14  ;;  %v803_v19 = vld [vmem:[%s908_s2 + $0x18] sm:$0xff]  ;;  %v22_v24 = vld [vmem:[%s908_s2 + $0x20] sm:$0xff]  ;;  %s722_s2 = smov 80  }
   0x6   :  { %657 = vmatprep.subr.bf16.mxu0 %v656_v5  ;;  %616 = vmatprep.mubr.msk.f32.mxu0 %vm35_vm0, %v769_v9  ;;  %v672_v20 = vpack.c.bf16 %v803_v19, %v798_v18  ;;  %v810_v25 = vrot.slane %v22_v24, %v33_v23 }
   0x7   :  { %669 = vmatprep.subr.bf16.mxu1 %v668_v12 }
   0x8   :  { %671 = vmatpush3.bf16.msra.mxu1 %v668_v12 }
   0x9   :  { %659 = vmatpush3.bf16.msra.mxu0 %v656_v5  ;;  %673 = vmatprep.subr.bf16.mxu1 %v672_v20 }
   0xa   :  { %661 = vmatprep.subr.bf16.mxu0 %v660_v13 }
   0xc   :  { %675 = vmatpush3.bf16.msra.mxu1 %v672_v20 }
   0xd   :  { %663 = vmatpush3.bf16.msra.mxu0 %v660_v13 }
   0xe   :  { %665 = vmatprep.subr.bf16.mxu0 %v664_v16 }
  0x11   :  { %667 = vmatpush3.bf16.msra.mxu0 %v664_v16 }
  0x14   :  { %617 = vmatmul.mubr.msk.f32.vlgmr.msra.gmra.mrb[0].mxu0 %vm35_vm0, %v791_v17 }
  0xe7   :  { %v618_v26 = vpop.f32.mrb[0].mxu0 }
  0xe8   :  { %v108_v27 = vpop.f32.mrb[1].mxu0  ;;  %v816_v29 = vadd.f32 %v618_v26, %v810_v25 }
  0xe9   :  { %v813_v28 = vadd.f32 %v108_v27, %v810_v25 }
  0xeb   :  { %627 = vmatprep.mubr.msk.f32.mxu1 %vm117_vm1, %v813_v28 }
  0xec   :  { %628 = vmatmul.mubr.msk.f32.vlgmr.msra.gmra.mrb[0].mxu1 %vm117_vm1, %v816_v29 }
 0x1bf   :  { %v629_v30 = vpop.f32.mrb[0].mxu1 }
 0x1c0   :  { %v190_v31 = vpop.f32.mrb[1].mxu1 }
 0x1c1   :  { %227 = vrot.lane.b32.xlu1 %v190_v31, %s722_s2  ;;  %201 = vrot.lane.b32.xlu0 %v190_v31, %s723_s11 }
 0x1c5   :  { %229 = vrot.lane.b32.xlu1 %v629_v30, %s722_s2  ;;  %203 = vrot.lane.b32.xlu0 %v629_v30, %s723_s11 }
 0x1c9   :  { %221 = vrot.lane.b32.xlu1 %v629_v30, %s724_s12  ;;  %219 = vrot.lane.b32.xlu0 %v190_v31, %s724_s12 }
 0x233   :  { %v228_v32 = vpop.permute.xlu1 %227  ;;  %v202_v33 = vpop.permute.xlu0 %201 }
 0x234   :  { %v207_v34 = vmul.f32 %v769_v9, %v202_v33  ;;  %v233_v36 = vmul.f32 %v769_v9, %v228_v32 }
 0x236   :  { %211 = vrot.lane.b32.xlu0 %v207_v34, %s725_s13 }
 0x237   :  { %v204_v35 = vpop.permute.xlu0 %203  ;;  %v230_v38 = vpop.permute.xlu1 %229 }
 0x238   :  { %v208_v37 = vmul.f32 %v791_v17, %v204_v35  ;;  %v234_v39 = vmul.f32 %v791_v17, %v230_v38  ;;  %v707_v38 = vpack.i.bf16 %v803_v19, %v798_v18 }
 0x23a   :  { %237 = vrot.lane.b32.xlu0 %v233_v36, %s725_s13  ;;  %213 = vrot.lane.b32.xlu1 %v208_v37, %s725_s13  ;;  %v702_v36 = vpack.i.bf16 %v779_v11, %v774_v10 }
 0x23b   :  { %v220_v40 = vpop.permute.xlu0 %219  ;;  %v222_v41 = vpop.permute.xlu1 %221 }
 0x23c   :  { %v225_v43 = vmul.f32 %v769_v9, %v220_v40  ;;  %v226_v48 = vmul.f32 %v791_v17, %v222_v41 }
 0x23e   :  { %239 = vrot.lane.b32.xlu1 %v234_v39, %s725_s13 }
 0x2a8   :  { %v212_v42 = vpop.permute.xlu0 %211 }
 0x2a9   :  { %v831_v44 = vsub.f32 %v207_v34, %v212_v42 }
 0x2ab   :  { %v245_v49 = vmul.f32 %v831_v44, %v831_v44  ;;  %v273_v55 = vmul.f32 2.0, %v831_v44 }
 0x2ac   :  { %v214_v45 = vpop.permute.xlu1 %213  ;;  %v238_v46 = vpop.permute.xlu0 %237 }
 0x2ad   :  { %v833_v47 = vadd.f32 %v238_v46, %v225_v43  ;;  %v838_v50 = vsub.f32 %v208_v37, %v214_v45 }
 0x2af   :  { %v247_v51 = vmul.f32 %v833_v47, %v833_v47  ;;  %v246_v56 = vmul.f32 %v838_v50, %v838_v50  ;;  %v275_v59 = vmul.f32 %v273_v55, %v833_v47  ;;  %v274_v60 = vmul.f32 2.0, %v838_v50 }
 0x2b0   :  { %v240_v52 = vpop.permute.xlu1 %239 }
 0x2b1   :  { %v842_v53 = vadd.f32 %v240_v52, %v226_v48  ;;  %v249_v54 = vsub.f32 %v245_v49, %v247_v51 }
 0x2b3   :  { %v248_v57 = vmul.f32 %v842_v53, %v842_v53  ;;  %253 = vrot.lane.b32.xlu0 %v249_v54, %s723_s11  ;;  %v276_v61 = vmul.f32 %v274_v60, %v842_v53 }
 0x2b5   :  { %v250_v58 = vsub.f32 %v246_v56, %v248_v57 }
 0x2b7   :  { %255 = vrot.lane.b32.xlu1 %v250_v58, %s723_s11  ;;  %279 = vrot.lane.b32.xlu0 %v275_v59, %s723_s11 }
 0x2bb   :  { %281 = vrot.lane.b32.xlu1 %v276_v61, %s723_s11 }
 0x325   :  { %v254_v62 = vpop.permute.xlu0 %253 }
 0x326   :  { %v260_v0 = vsel %vm259_vm2, %v254_v62, 0.0 }
 0x329   :  { %v256_v63 = vpop.permute.xlu1 %255  ;;  %v280_v2 = vpop.permute.xlu0 %279 }
 0x32a   :  { %v261_v1 = vsel %vm259_vm2, %v256_v63, 0.0  ;;  %v285_v5 = vsel %vm259_vm2, %v280_v2, 0.0 }
 0x32b   :  { %v262_v3 = vadd.f32 %v261_v1, %v260_v0 }
 0x32d   :  { %v282_v4 = vpop.permute.xlu1 %281  ;;  %263 = vadd.xlane.f32.xlu0 %v262_v3 }
 0x32e   :  { %v286_v6 = vsel %vm259_vm2, %v282_v4, 0.0 }
 0x32f   :  { %v287_v7 = vadd.f32 %v286_v6, %v285_v5 }
 0x331   :  { %288 = vadd.xlane.f32.xlu1 %v287_v7 }
 0x3ba   :  { %v264_v8 = vpop.xlane.xlu0 %263 }
 0x3bb   :  { %v265_v12 = vrot.slane %v264_v8, 4 }
 0x3bd   :  { %v266_v13 = vadd.f32 %v265_v12, %v264_v8 }
 0x3be   :  { %v289_v14 = vpop.xlane.xlu1 %288 }
 0x3bf   :  { %v267_v15 = vrot.slane %v266_v13, 2  ;;  %v290_v16 = vrot.slane %v289_v14, 4 }
 0x3c1   :  { %v291_v20 = vadd.f32 %v290_v16, %v289_v14  ;;  %v268_v21 = vadd.f32 %v267_v15, %v266_v13 }
 0x3c3   :  { %v292_v22 = vrot.slane %v291_v20, 2  ;;  %v269_v23 = vrot.slane %v268_v21, 1 }
 0x3c5   :  { %v270_v24 = vadd.f32 %v269_v23, %v268_v21  ;;  %v293_v26 = vadd.f32 %v292_v22, %v291_v20 }
 0x3c7   :  { %692 = vpush %v270_v24  ;;  %v294_v27 = vrot.slane %v293_v26, 1 }
 0x3c9   :  { %v295_v30 = vadd.f32 %v294_v27, %v293_v26 }
 0x3cb   :  { %694 = vpush %v295_v30 }
 0x3f8   :  { %s693_s14 = spop %692 }
 0x3f9   :  { %s272_s15 = smul.f32 0.0009882117, %s693_s14 }
 0x3fb   :  { %v298_v31 = vstv %s272_s15 }
 0x3fc   :  { %v299_v32 = vmul.f32 %v769_v9, %v298_v31  ;;  %s695_s16 = spop %694  ;;  %v300_v34 = vmul.f32 %v791_v17, %v298_v31 }
 0x3fd   :  { %s297_s17 = smul.f32 0.0009882117, %s695_s16 }
 0x3fe   :  { %303 = vrot.lane.b32.xlu0 %v299_v32, %s726_s18 }
 0x3ff   :  { %v311_v33 = vstv %s297_s17 }
 0x400   :  { %v312_v35 = vmul.f32 %v769_v9, %v311_v33  ;;  %v313_v37 = vmul.f32 %v791_v17, %v311_v33 }
 0x402   :  { %316 = vrot.lane.b32.xlu1 %v312_v35, %s726_s18  ;;  %305 = vrot.lane.b32.xlu0 %v300_v34, %s726_s18 }
 0x406   :  { %318 = vrot.lane.b32.xlu1 %v313_v37, %s726_s18  ;;  %703 = vrot.lane.b32.xlu0 %v702_v36, %s726_s18 }
 0x40a   :  { %708 = vrot.lane.b32.xlu1 %v707_v38, %s726_s18 }
 0x470   :  { %v304_v39 = vpop.permute.xlu0 %303 }
 0x471   :  { %v309_v9 = vadd.f32 %v304_v39, %v831_v44 }
 0x473   :  { %326 = vrot.lane.b32.xlu0 %v309_v9, %s723_s11 }
 0x474   :  { %v317_v40 = vpop.permute.xlu1 %316  ;;  %v306_v41 = vpop.permute.xlu0 %305 }
 0x475   :  { %v322_v10 = vadd.f32 %v317_v40, %v833_v47  ;;  %v310_v11 = vadd.f32 %v306_v41, %v838_v50 }
 0x477   :  { %334 = vrot.lane.b32.xlu1 %v322_v10, %s722_s2  ;;  %328 = vrot.lane.b32.xlu0 %v310_v11, %s723_s11 }
 0x478   :  { %v319_v17 = vpop.permute.xlu1 %318  ;;  %v704_v42 = vpop.permute.xlu0 %703 }
 0x479   :  { %v323_v18 = vadd.f32 %v319_v17, %v842_v53  ;;  %v706_v19 = vunpack.i.h.bf16 %v704_v42  ;;  %v705_v43 = vunpack.i.l.bf16 %v704_v42 }
 0x47b   :  { %336 = vrot.lane.b32.xlu1 %v323_v18, %s722_s2  ;;  %v676_v44 = vpack.c.bf16 %v706_v19, %v705_v43  ;;  %713 = vrot.lane.b32.xlu0 %v702_v36, %s723_s11 }
 0x47c   :  { %v709_v45 = vpop.permute.xlu1 %708 }
 0x47d   :  { %v711_v46 = vunpack.i.h.bf16 %v709_v45  ;;  %v710_v47 = vunpack.i.l.bf16 %v709_v45  ;;  %677 = vmatprep.subr.bf16.mxu1 %v676_v44 }
 0x47e   :  { %679 = vmatpush3.bf16.msra.mxu1 %v676_v44 }
 0x47f   :  { %v680_v48 = vpack.c.bf16 %v711_v46, %v710_v47  ;;  %718 = vrot.lane.b32.xlu1 %v707_v38, %s723_s11  ;;  %452 = vrot.lane.b32.xlu0 %v810_v25, %s726_s18 }
 0x481   :  { %681 = vmatprep.subr.bf16.mxu1 %v680_v48 }
 0x482   :  { %683 = vmatpush3.bf16.msra.mxu1 %v680_v48 }
 0x4e5   :  { %v327_v49 = vpop.permute.xlu0 %326 }
 0x4e9   :  { %v335_v50 = vpop.permute.xlu1 %334  ;;  %v329_v51 = vpop.permute.xlu0 %328 }
 0x4ea   :  { %v340_v52 = vsel %vm259_vm2, %v327_v49, %v335_v50 }
 0x4eb   :  { %638 = vmatprep.mubr.msk.f32.mxu1 %vm117_vm1, %v340_v52 }
 0x4ed   :  { %v337_v53 = vpop.permute.xlu1 %336  ;;  %v714_v54 = vpop.permute.xlu0 %713 }
 0x4ee   :  { %v341_v55 = vsel %vm259_vm2, %v329_v51, %v337_v53  ;;  %v716_v56 = vunpack.i.h.bf16 %v714_v54  ;;  %v715_v57 = vunpack.i.l.bf16 %v714_v54 }
 0x4ef   :  { %639 = vmatmul.mubr.msk.f32.vlgmr.msra.gmra.mrb[2].mxu1 %vm117_vm1, %v341_v55 }
 0x4f0   :  { %v684_v58 = vpack.c.bf16 %v716_v56, %v715_v57 }
 0x4f1   :  { %v719_v59 = vpop.permute.xlu1 %718  ;;  %v453_v0 = vpop.permute.xlu0 %452 }
 0x4f2   :  { %v721_v25 = vunpack.i.h.bf16 %v719_v59  ;;  %v720_v60 = vunpack.i.l.bf16 %v719_v59  ;;  %685 = vmatprep.subr.bf16.mxu0 %v684_v58 }
 0x4f3   :  { %687 = vmatpush3.bf16.msra.mxu0 %v684_v58 }
 0x4f4   :  { %v688_v61 = vpack.c.bf16 %v721_v25, %v720_v60 }
 0x4f6   :  { %689 = vmatprep.subr.bf16.mxu0 %v688_v61 }
 0x4f7   :  { %691 = vmatpush3.bf16.msra.mxu0 %v688_v61 }
 0x5c2   :  { %v640_v62 = vpop.f32.mrb[2].mxu1 }
 0x5c3   :  { %538 = vrot.lane.b32.xlu0 %v640_v62, %s727_s19  ;;  %v430_v63 = vpop.f32.mrb[3].mxu1 }
 0x5c4   :  { %536 = vrot.lane.b32.xlu1 %v430_v63, %s727_s19  ;;  %649 = vmatprep.mubr.msk.f32.mxu0 %vm117_vm1, %v430_v63 }
 0x5c5   :  { %650 = vmatmul.mubr.msk.f32.vlgmr.msra.gmra.mrb[2].mxu0 %vm117_vm1, %v640_v62 }
 0x635   :  { %v539_v5 = vpop.permute.xlu0 %538 }
 0x636   :  { %v537_v6 = vpop.permute.xlu1 %536  ;;  %v551_v7 = vsel %vm117_vm1, %v816_v29, %v539_v5 }
 0x637   :  { %v550_v12 = vsel %vm117_vm1, %v813_v28, %v537_v6 }
 0x698   :  { %v651_v1 = vpop.f32.mrb[2].mxu0 }
 0x699   :  { %v533_v2 = vadd.f32 %v651_v1, %v453_v0  ;;  %v527_v3 = vpop.f32.mrb[3].mxu0 }
 0x69a   :  { %v528_v4 = vadd.f32 %v527_v3, %v453_v0 }
 0x69b   :  { %546 = vrot.lane.b32.xlu0 %v533_v2, %s723_s11 }
 0x69c   :  { %544 = vrot.lane.b32.xlu1 %v528_v4, %s723_s11 }
 0x70d   :  { %v547_v8 = vpop.permute.xlu0 %546 }
 0x70e   :  { %v553_v13 = vsel %vm35_vm0, %v551_v7, %v547_v8  ;;  %v545_v14 = vpop.permute.xlu1 %544 }
 0x70f   :  { %555 = vst [vmem:[%s909_s3 + $0x8] sm:$0xff] %v553_v13  ;;  %v552_v15 = vsel %vm35_vm0, %v550_v12, %v545_v14 }
 0x710   :  { %554 = vst [vmem:[%s909_s3] sm:$0xff] %v552_v15 }

</bundles_post_ra>
